<compile_context>
chip_gen: v7x
topology: tpu7x:2x2x1
jax: 0.10.0
libtpu: 0.0.40
codegen_flags: <defaults>
</compile_context>

<pallas_src>
import functools
import math

import jax
import jax.numpy as jnp
from jax.experimental import pallas as pl
from jax.experimental.pallas import tpu as pltpu


def _round_up(x, m):
    return ((x + m - 1) // m) * m


def _embed_kernel(ids_ref, emb_hbm, o_ref, row_buf, sem, *, tm, scale):
    """Gather `tm` embedding rows from HBM, scale, and write one output tile.

    ids_ref : SMEM (M_pad,) int32  -- scalar-prefetched token ids.
    emb_hbm : HBM  (V, D)          -- embedding table (manual DMA, pl.ANY).
    o_ref   : VMEM (tm, D)         -- output tile for this grid step.
    row_buf : VMEM (tm, D)         -- gather landing buffer.
    sem     : DMA semaphore shared by all row copies of this tile.
    """
    base = pl.program_id(0) * tm

    # Issue all tm row-gather DMAs up front so they overlap in the DMA queue.
    @pl.loop(0, tm)
    def _issue(t):
        tok = ids_ref[base + t]
        pltpu.make_async_copy(emb_hbm.at[tok], row_buf.at[t], sem).start()

    # Drain: every copy has the same size, so tm waits on the shared semaphore
    # guarantee all rows have landed (src index in the wait is only used to
    # compute the expected completion size).
    @pl.loop(0, tm)
    def _drain(t):
        pltpu.make_async_copy(emb_hbm.at[0], row_buf.at[t], sem).wait()

    o_ref[...] = (row_buf[...].astype(jnp.float32) * scale).astype(o_ref.dtype)


def input_embeddings(token_ids, emb_table, *, tm=128):
    """token_ids: [B, S] int; emb_table: [vocab, dim_model].

    Returns [B, S, dim_model] = emb_table[token_ids] * sqrt(dim_model).
    """
    B, S = token_ids.shape
    V, D = emb_table.shape
    M = B * S
    scale = math.sqrt(D)

    # Row tile: multiple of 8 (f32 sublane), clamped to the (padded) problem.
    tm = _round_up(max(8, min(tm, _round_up(M, 8))), 8)
    M_pad = _round_up(M, tm)

    ids = token_ids.reshape(M).astype(jnp.int32)
    if M_pad != M:
        ids = jnp.pad(ids, (0, M_pad - M))  # pad with token 0 (always a valid row)

    kernel = functools.partial(_embed_kernel, tm=tm, scale=scale)

    elt = emb_table.dtype.itemsize
    cost = pl.CostEstimate(
        flops=M_pad * D,                                   # one scale-mul per elem
        transcendentals=0,
        bytes_accessed=2 * M_pad * D * elt + M_pad * 4)    # gather + write + ids

    out = pl.pallas_call(
        kernel,
        out_shape=jax.ShapeDtypeStruct((M_pad, D), emb_table.dtype),
        grid_spec=pltpu.PrefetchScalarGridSpec(
            num_scalar_prefetch=1,                 # token ids -> SMEM
            grid=(M_pad // tm,),
            in_specs=[
                pl.BlockSpec(memory_space=pl.ANY),  # embedding table stays in HBM
            ],
            out_specs=pl.BlockSpec((tm, D), lambda i, ids: (i, 0)),
            scratch_shapes=[
                pltpu.VMEM((tm, D), emb_table.dtype),   # gather buffer
                pltpu.SemaphoreType.DMA(()),            # shared row-copy semaphore
            ],
        ),
        compiler_params=pltpu.CompilerParams(
            dimension_semantics=("parallel",),          # shards across TCs on v7x
            vmem_limit_bytes=32 * 1024 * 1024),
        cost_estimate=cost,
    )(ids, emb_table)

    return out[:M].reshape(B, S, D)


if __name__ == "__main__":
    batch, seq, dim_model, vocab_size = 2, 8, 128, 512

    key = jax.random.PRNGKey(0)
    k_ids, k_emb = jax.random.split(key)
    token_ids = jax.random.randint(k_ids, (batch, seq), 0, vocab_size,
                                   dtype=jnp.int32)
    # nn.Embedding default init is N(0, 1)
    emb_table = jax.random.normal(k_emb, (vocab_size, dim_model), jnp.float32)

    out = input_embeddings(token_ids, emb_table)
    out = jax.block_until_ready(out)

    # pure-JAX reference check
    ref = emb_table[token_ids] * math.sqrt(dim_model)
    assert out.shape == (batch, seq, dim_model)
    assert jnp.allclose(out, ref, atol=1e-6, rtol=1e-6)

    print("KERNEL_OK")
</pallas_src>

<mosaic_0001>
module attributes {stable_mosaic.version = 11 : i64} {
  func.func @_embed_kernel(%arg0: i32, %arg1: memref<16xi32, #tpu.memory_space<smem>>, %arg2: memref<512x128xf32, #tpu.memory_space<any>>, %arg3: memref<16x128xf32, #tpu.memory_space<vmem>>, %arg4: memref<16x128xf32, #tpu.memory_space<vmem>>, %arg5: memref<!tpu.dma_semaphore, #tpu.memory_space<semaphore_mem>>) attributes {dimension_semantics = [#tpu.dimension_semantics<parallel>], iteration_bounds = array<i64: 1>, scalar_prefetch = 1 : i64, scratch_operands = 2 : i64, tpu.core_type = #tpu.core_type<tc>, window_params = [{}, {transform_indices = @transform_1, window_bounds = array<i64: 16, 128>}]} {
    %c16_i32 = arith.constant 16 : i32
    %0 = arith.muli %arg0, %c16_i32 : i32
    %c0_i32 = arith.constant 0 : i32
    %c16_i32_0 = arith.constant 16 : i32
    %1 = arith.addi %c0_i32, %c16_i32_0 : i32
    %c1_i32 = arith.constant 1 : i32
    scf.for %arg6 = %c0_i32 to %1 step %c1_i32  : i32 {
      %c1_i32_9 = arith.constant 1 : i32
      %7 = arith.muli %arg6, %c1_i32_9 : i32
      %c0_i32_10 = arith.constant 0 : i32
      %8 = arith.addi %c0_i32_10, %7 : i32
      %9 = arith.addi %0, %8 : i32
      %10 = arith.index_cast %9 : i32 to index
      %11 = memref.load %arg1[%10] : memref<16xi32, #tpu.memory_space<smem>>
      %c0_i32_11 = arith.constant 0 : i32
      %12 = tpu.memref_slice %arg2[%11, %c0_i32_11] : memref<512x128xf32, #tpu.memory_space<any>> -> memref<1x128xf32, #tpu.memory_space<any>>
      %13 = tpu.memref_squeeze %12 : memref<1x128xf32, #tpu.memory_space<any>> -> memref<128xf32, #tpu.memory_space<any>>
      %c0_i32_12 = arith.constant 0 : i32
      %14 = tpu.memref_slice %arg4[%8, %c0_i32_12] : memref<16x128xf32, #tpu.memory_space<vmem>> -> memref<1x128xf32, #tpu.memory_space<vmem>>
      %15 = tpu.memref_squeeze %14 : memref<1x128xf32, #tpu.memory_space<vmem>> -> memref<128xf32, #tpu.memory_space<vmem>>
      tpu.enqueue_dma source(%13 : memref<128xf32, #tpu.memory_space<any>>) target(%15 : memref<128xf32, #tpu.memory_space<vmem>>) target_semaphore(%arg5 : memref<!tpu.dma_semaphore, #tpu.memory_space<semaphore_mem>>)
    }
    %c16_i32_1 = arith.constant 16 : i32
    %c0_i32_2 = arith.constant 0 : i32
    %c16_i32_3 = arith.constant 16 : i32
    %2 = arith.addi %c0_i32_2, %c16_i32_3 : i32
    %c1_i32_4 = arith.constant 1 : i32
    scf.for %arg6 = %c0_i32_2 to %2 step %c1_i32_4  : i32 {
      %c1_i32_9 = arith.constant 1 : i32
      %7 = arith.muli %arg6, %c1_i32_9 : i32
      %c0_i32_10 = arith.constant 0 : i32
      %8 = arith.addi %c0_i32_10, %7 : i32
      %c0_i32_11 = arith.constant 0 : i32
      %c0_i32_12 = arith.constant 0 : i32
      %9 = tpu.memref_slice %arg2[%c0_i32_11, %c0_i32_12] : memref<512x128xf32, #tpu.memory_space<any>> -> memref<1x128xf32, #tpu.memory_space<any>>
      %10 = tpu.memref_squeeze %9 : memref<1x128xf32, #tpu.memory_space<any>> -> memref<128xf32, #tpu.memory_space<any>>
      %c0_i32_13 = arith.constant 0 : i32
      %11 = tpu.memref_slice %arg4[%8, %c0_i32_13] : memref<16x128xf32, #tpu.memory_space<vmem>> -> memref<1x128xf32, #tpu.memory_space<vmem>>
      %12 = tpu.memref_squeeze %11 : memref<1x128xf32, #tpu.memory_space<vmem>> -> memref<128xf32, #tpu.memory_space<vmem>>
      tpu.wait_dma2 semaphore(%arg5 : memref<!tpu.dma_semaphore, #tpu.memory_space<semaphore_mem>>) src(%10 : memref<128xf32, #tpu.memory_space<any>>) dst(%12 : memref<128xf32, #tpu.memory_space<vmem>>)
    }
    %c16_i32_5 = arith.constant 16 : i32
    %c0 = arith.constant 0 : index
    %c0_6 = arith.constant 0 : index
    %3 = vector.load %arg4[%c0, %c0_6] : memref<16x128xf32, #tpu.memory_space<vmem>>, vector<16x128xf32>
    %cst = arith.constant 11.3137083 : f32
    %4 = vector.broadcast %cst : f32 to vector<16x128xf32>
    %5 = arith.mulf %3, %4 : vector<16x128xf32>
    %c0_7 = arith.constant 0 : index
    %c0_8 = arith.constant 0 : index
    %6 = vector.load %arg3[%c0_7, %c0_8] : memref<16x128xf32, #tpu.memory_space<vmem>>, vector<16x128xf32>
    tpu.vector_store %arg3[%c0_7, %c0_8], %5 {strides = array<i32>} : memref<16x128xf32, #tpu.memory_space<vmem>>, vector<16x128xf32>,
    return
  }
  func.func @transform_1(%arg0: i32, %arg1: memref<16xi32, #tpu.memory_space<smem>>) -> (i32, i32) {
    %c0_i32 = arith.constant 0 : i32
    %c0_i32_0 = arith.constant 0 : i32
    return %arg0, %c0_i32 : i32, i32
  }
}

</mosaic_0001>

<bundles_post_ra>
// kernel: tpu_custom_call.1
= control target key start
LH: loop header
LB: loop body
LE: loop exit
PB: predicated region body
PF: predicated region fallthrough
CT: control target
= control target key end

     0   :  { %s247_s0 = inlined_call_operand.hbm [shape: s32[16], index: 0, kind: input, shape index: {}]   ;;  %s248_s1 = inlined_call_operand.hbm [shape: f32[512,128], index: 1, kind: input, shape index: {}]   ;;  %s249_s2 = inlined_call_operand.hbm [shape: f32[16,128], index: 2, kind: output, shape index: {}]  }
   0x1   :  { %s106_s11 = scalar_lea.hbm %s247_s0, 16 }
   0x2   :  { %p107_p0 = scmp.ne.s32.totalorder %s247_s0, %s106_s11  ;;  %p110_p1 = scmp.lt.u32.totalorder %s106_s11, %s247_s0 }
   0x4   :  { %p112_p2 = pnand %p110_p1, %p107_p0 }
   0x6   :  { %115 = shalt.err (!%p112_p2)  }
   0x7   :  { %s184_s16 = smov [#allocation5]  }
   0x8   :  { %8 = dma.hbm_to_smem %s247_s0, 16, %s184_s16, [#allocation4] }
   0x9   :  { %170 = dma.done.wait [#allocation4], 16 }
   0xa   :  { %171 = vsyncadd [#allocation4], 4294967280 }
   0xb   :  { %10 = sfence }
   0xc   :  { %11 = vsyncpa [#allocation7], 0  ;;  %s216_s19 = smov 0  }
   0xd LB: > { %s20_s20 = sld [smem:[#allocation5 + %s178_s19]]  ;;  %s23_s21 = scalar_lea.vmem [#allocation2], %s178_s19  ;;  %s178_s19 = sphi %s216_s19, %s18_s19  }
   0xe   : > { %s31_s22 = sshll.u32 %s23_s21, 4  ;;  %s118_s29 = scalar_lea.hbm %s248_s1, 8192  ;;  %s32_s22 = int_to_ptr.vmem [resolvable:$true] %s31_s22 }
  0x13   : > { %s84_s23 = sshll.u32 %s20_s20, 4 }
  0x14   : > { %s22_s25 = scalar_lea.hbm %s248_s1, %s84_s23 }
  0x15   : > { %s116_s26 = scalar_lea.hbm %s22_s25, 16  ;;  %p119_p4 = scmp.lt.u32.totalorder %s22_s25, %s248_s1 }
  0x16   : > { %p117_p3 = scmp.ne.s32.totalorder %s22_s25, %s116_s26  ;;  %p120_p5 = scmp.lt.u32.totalorder %s118_s29, %s116_s26 }
  0x17   : > { %p122_p7 = scmp.lt.u32.totalorder %s116_s26, %s22_s25 }
  0x18   : > { %p121_p6 = por %p120_p5, %p119_p4 }
  0x1a   : > { %p123_p8 = por %p122_p7, %p121_p6 }
  0x1c   : > { %p124_p9 = pnand %p123_p8, %p117_p3 }
  0x1e   : > { %127 = shalt.err (!%p124_p9)  }
  0x1f   : > { %s128_s4 = scalar_lea.vmem %s32_s22, 16  ;;  %s185_s5 = smov [#allocation2]  }
  0x20   : > { %p129_p10 = scmp.ne.s32.totalorder %s32_s22, %s128_s4  ;;  %s130_s6 = sshll.u32 %s185_s5, 4  ;;  %s131_s6 = int_to_ptr.vmem [resolvable:$false] %s130_s6 }
  0x21   : > { %s132_s7 = scalar_lea.vmem %s131_s6, 256  ;;  %p133_p11 = scmp.lt.s32.totalorder %s32_s22, %s131_s6 }
  0x22   : > { %p134_p12 = scmp.lt.s32.totalorder %s132_s7, %s128_s4 }
  0x24   : > { %p135_p13 = por %p134_p12, %p133_p11 }
  0x26   : > { %p136_p0 = pnand %p135_p13, %p129_p10 }
  0x28   : > { %139 = shalt.err (!%p136_p0)  }
  0x29   : > { %34 = dma.hbm_to_vmem [thread:$0]  %s22_s25, 16, %s32_s22, [#allocation3] }
  0x2a   : > { %s18_s19 = sadd.s32 1, %s178_s19  }
  0x2b   : > { %p15_p1 = scmp.ge.s32.totalorder %s18_s19, 16  }
  0x2c   :  { %s180_s8 = smov (%p15_p1), 0  }
  0x2d   :  { %17 = sbr.rel (!%p15_p1) target bundleno = 13 (0xd), region = 40 }
  0x34 LB: > { %172 = dma.done.wait [#allocation3], 16  ;;  %s182_s8 = sphi %s180_s8, %s40_s8  }
  0x35   : > { %173 = vsyncadd [#allocation3], 4294967280  ;;  %s40_s8 = sadd.s32 1, %s182_s8  }
  0x36   : > { %p37_p2 = scmp.ge.s32.totalorder %s40_s8, 16  }
  0x37   :  { %v43_v0 = vld [vmem:[#allocation2] sm:$0xff] (%p37_p2)  ;;  %v44_v1 = vld [vmem:[#allocation2 + $0x8] sm:$0xff] (%p37_p2)  ;;  %s186_s9 = smov (%p37_p2), [#allocation6]  }
  0x38   :  { %39 = sbr.rel (!%p37_p2) target bundleno = 52 (0x34), region = 51  ;;  %v45_v2 = vmul.f32 (%p37_p2), 11.313708, %v43_v0  ;;  %v46_v3 = vmul.f32 (%p37_p2), 11.313708, %v44_v1  ;;  %s54_s10 = sshll.u32 (%p37_p2), %s186_s9, 4  ;;  %s55_s10 = int_to_ptr.vmem [resolvable:$true] %s54_s10 }
  0x39   :  { %s140_s11 = scalar_lea.vmem (%p37_p2), %s55_s10, 256  ;;  %p145_p4 = scmp.lt.s32.totalorder (%p37_p2), %s55_s10, %s55_s10 }
  0x3a   :  { %47 = vst [vmem:[#allocation6] sm:$0xff] (%p37_p2), %v45_v2  ;;  %48 = vst [vmem:[#allocation6 + $0x8] sm:$0xff] (%p37_p2), %v46_v3  ;;  %p141_p3 = scmp.ne.s32.totalorder (%p37_p2), %s55_s10, %s140_s11  ;;  %p146_p5 = scmp.lt.s32.totalorder (%p37_p2), %s140_s11, %s140_s11 }
  0x3c   :  { %p147_p6 = por (%p37_p2), %p146_p5, %p145_p4 }
  0x3e   :  { %p148_p7 = pnand (%p37_p2), %p147_p6, %p141_p3 }
  0x40   :  { %151 = shalt.err (!%p148_p7)
}
  0x41   :  { %s152_s13 = scalar_lea.hbm %s249_s2, 256 }
  0x42   :  { %p153_p8 = scmp.ne.s32.totalorder %s249_s2, %s152_s13  ;;  %p156_p9 = scmp.lt.u32.totalorder %s152_s13, %s249_s2 }
  0x44   :  { %p158_p10 = pnand %p156_p9, %p153_p8 }
  0x46   :  { %161 = shalt.err (!%p158_p10)
}
  0x47   :  { %s187_s18 = smov 128   ;;  %s188_s19 = smov 8  }
  0x48   :  { %60 = dma.vmem_to_hbm [thread:$0]  %s55_s10, 256, %s249_s2, [#allocation7], %s187_s18, %s187_s18, %s188_s19  }
  0x49   :  { %174 = dma.done.wait [#allocation7], 256  }
  0x4a   :  { %175 = vsyncadd [#allocation7], 4294967040 }
  0x4b   :  { %64 = vsyncpa [#allocation7], 1 }
  0x4c   :  { %65 = vsyncmov [#allocation3] }
  0x4f   :  { %s66_s22 = vpop.sfrf %65 }
  0x50   :  { %p85_p11 = scmp.ne.s32.totalorder %s66_s22, 0 }
  0x52   :  { %70 = shalt.err (%p85_p11)  }

</bundles_post_ra>
